<compile_context>
chip_gen: v7x
topology: tpu7x:2x2x1
jax: 0.10.0
libtpu: 0.0.40
codegen_flags: <defaults>
</compile_context>

<pallas_src>
import functools

import jax
import jax.numpy as jnp
from jax.experimental import pallas as pl
from jax.experimental.pallas import tpu as pltpu

LANE = 128                      # pad every feature dim to one full vreg lane width
WEIGHT_DTYPE = jnp.bfloat16     # MXU-native operand dtype (accumulation stays f32)


def _round_up(x, m):
    return (x + m - 1) // m * m


def _mlp_kernel(x_ref, w_ref, b_ref, out_ref):
    """Fused (Linear -> ReLU) x 3 -> Linear -> Sigmoid.

    x_ref:   (TB, 128)     f32  batch tile, features zero-padded to 128 lanes
    w_ref:   (L, 128, 128) bf16 all layer weights, each zero-padded into [:in_i, :out_i]
    b_ref:   (L, 1, 128)   f32  all biases, zero-padded
    out_ref: (TB, 128)     f32  lane-dense output (wrapper slices to the real out_dim)
    """
    num_layers = w_ref.shape[0]

    # bf16 operands into the MXU, f32 accumulation.
    h = x_ref[...].astype(w_ref.dtype)
    for i in range(num_layers - 1):
        z = jnp.dot(h, w_ref[i], preferred_element_type=jnp.float32) + b_ref[i]
        h = jnp.maximum(z, 0.0).astype(w_ref.dtype)        # ReLU, back to bf16 for MXU

    z = jnp.dot(h, w_ref[num_layers - 1],
                preferred_element_type=jnp.float32) + b_ref[num_layers - 1]

    # sigmoid(z) = 1 / (1 + exp(-z)); exp and approx reciprocal both run on the EUP,
    # keeping the epilogue off the VALU slot.
    out_ref[...] = pl.reciprocal(1.0 + jnp.exp(-z), approx=True)


@functools.partial(jax.jit, static_argnames=("out_dim",))
def nn_model_forward(x, w_slab, b_slab, *, out_dim):
    """x: (batch, in_features) f32; w_slab/b_slab from pack_params()."""
    batch, in_dim = x.shape

    # Batch tiling: small batches -> single grid step; large batches -> 512-row tiles
    # (streams near HBM roofline) split "parallel" across TensorCores.
    padded_rows = _round_up(batch, 8)
    tb = min(512, padded_rows)
    grid_rows = pl.cdiv(padded_rows, tb)
    padded_batch = grid_rows * tb

    x_pad = jnp.zeros((padded_batch, LANE), jnp.float32)
    x_pad = x_pad.at[:batch, :in_dim].set(x.astype(jnp.float32))

    out_padded = pl.pallas_call(
        _mlp_kernel,
        out_shape=jax.ShapeDtypeStruct((padded_batch, LANE), jnp.float32),
        grid_spec=pltpu.PrefetchScalarGridSpec(
            num_scalar_prefetch=0,
            grid=(grid_rows,),
            in_specs=[
                pl.BlockSpec((tb, LANE), lambda i: (i, 0)),
                # Constant index_map: params are fetched once and stay resident in VMEM
                # across grid steps (they are also kept resident across calls by reusing
                # the same device arrays).
                pl.BlockSpec(w_slab.shape, lambda i: (0, 0, 0)),
                pl.BlockSpec(b_slab.shape, lambda i: (0, 0, 0)),
            ],
            out_specs=pl.BlockSpec((tb, LANE), lambda i: (i, 0)),
        ),
        compiler_params=pltpu.CompilerParams(
            dimension_semantics=("parallel",)),
    )(x_pad, w_slab, b_slab)

    return out_padded[:batch, :out_dim]


def init_params(layers_sizes, key):
    """PyTorch-Linear-style init (uniform +/- 1/sqrt(fan_in)); W stored as (in, out)."""
    params = []
    for i in range(len(layers_sizes) - 1):
        fan_in, fan_out = layers_sizes[i], layers_sizes[i + 1]
        key, kw, kb = jax.random.split(key, 3)
        bound = 1.0 / (fan_in ** 0.5)
        w = jax.random.uniform(kw, (fan_in, fan_out), jnp.float32, -bound, bound)
        b = jax.random.uniform(kb, (fan_out,), jnp.float32, -bound, bound)
        params.append((w, b))
    return params


def pack_params(params, weight_dtype=WEIGHT_DTYPE):
    """Pack per-layer (W, b) into two zero-padded slabs (done ONCE at init).

    Zero padding is free at runtime: padded K rows / N columns contribute 0 to every
    matmul and the padded output lanes are sliced off by the wrapper.
    """
    n = len(params)
    for w, _ in params:
        assert w.shape[0] <= LANE and w.shape[1] <= LANE, "layer wider than 128 lanes"
    w_slab = jnp.zeros((n, LANE, LANE), weight_dtype)
    b_slab = jnp.zeros((n, 1, LANE), jnp.float32)
    for i, (w, b) in enumerate(params):
        fi, fo = w.shape
        w_slab = w_slab.at[i, :fi, :fo].set(w.astype(weight_dtype))
        b_slab = b_slab.at[i, 0, :fo].set(jnp.reshape(b, (-1,)).astype(jnp.float32))
    return w_slab, b_slab


def reference_forward(x, params):
    """Pure-JAX f32 reference."""
    h = x
    for i, (w, b) in enumerate(params):
        h = h @ w + b
        if i < len(params) - 1:
            h = jnp.maximum(h, 0.0)
    return jax.nn.sigmoid(h)


if __name__ == "__main__":
    # layers_sizes defines the 4 Linear layers of the MLP.
    layers_sizes = [32, 64, 64, 32, 16]
    batch = 8

    key = jax.random.PRNGKey(0)
    key, kx = jax.random.split(key)
    x = jax.random.normal(kx, (batch, layers_sizes[0]), jnp.float32)

    params = init_params(layers_sizes, key)
    # Pack once; keep the packed slabs resident on device and reuse across calls.
    w_slab, b_slab = pack_params(params)
    w_slab = jax.device_put(w_slab)
    b_slab = jax.device_put(b_slab)

    out = nn_model_forward(x, w_slab, b_slab, out_dim=layers_sizes[-1])
    out = jax.block_until_ready(out)

    ref = reference_forward(x, params)
    assert out.shape == (batch, layers_sizes[-1])
    # bf16 weights/activations + approx reciprocal -> quantization-appropriate tolerance
    # (f32 reference); accumulation and the sigmoid epilogue remain f32 in-kernel.
    assert jnp.allclose(out, ref, atol=3e-2, rtol=3e-2), float(jnp.max(jnp.abs(out - ref)))

    print("KERNEL_OK")
</pallas_src>

<mosaic_0001>
module attributes {stable_mosaic.version = 11 : i64} {
  func.func @_mlp_kernel(%arg0: i32, %arg1: memref<8x128xf32, #tpu.memory_space<vmem>>, %arg2: memref<4x128x128xbf16, #tpu.memory_space<vmem>>, %arg3: memref<4x1x128xf32, #tpu.memory_space<vmem>>, %arg4: memref<8x128xf32, #tpu.memory_space<vmem>>) attributes {dimension_semantics = [#tpu.dimension_semantics<parallel>], iteration_bounds = array<i64: 1>, scalar_prefetch = 0 : i64, scratch_operands = 0 : i64, tpu.core_type = #tpu.core_type<tc>, window_params = [{transform_indices = @transform_0, window_bounds = array<i64: 8, 128>}, {pipeline_mode = #tpu.pipeline_mode<synchronous>, transform_indices = @transform_1, window_bounds = array<i64: 4, 128, 128>}, {pipeline_mode = #tpu.pipeline_mode<synchronous>, transform_indices = @transform_2, window_bounds = array<i64: 4, 1, 128>}, {transform_indices = @transform_3, window_bounds = array<i64: 8, 128>}]} {
    %c0 = arith.constant 0 : index
    %c0_0 = arith.constant 0 : index
    %0 = vector.load %arg1[%c0, %c0_0] : memref<8x128xf32, #tpu.memory_space<vmem>>, vector<8x128xf32>
    %1 = arith.truncf %0 : vector<8x128xf32> to vector<8x128xbf16>
    %c0_1 = arith.constant 0 : index
    %c0_2 = arith.constant 0 : index
    %c0_3 = arith.constant 0 : index
    %2 = vector.load %arg2[%c0_1, %c0_2, %c0_3] : memref<4x128x128xbf16, #tpu.memory_space<vmem>>, vector<1x128x128xbf16>
    %3 = vector.shape_cast %2 : vector<1x128x128xbf16> to vector<128x128xbf16>
    %cst = arith.constant dense<0.000000e+00> : vector<8x128xf32>
    %4 = tpu.matmul %1, %3, %cst {dimension_numbers = #tpu.dot_dimension_numbers<[1], [0], [0], [1], [0, 0, 1, 1], [], []>} : vector<8x128xbf16>, vector<128x128xbf16>, vector<8x128xf32> -> vector<8x128xf32>
    %c0_4 = arith.constant 0 : index
    %c0_5 = arith.constant 0 : index
    %c0_6 = arith.constant 0 : index
    %5 = vector.load %arg3[%c0_4, %c0_5, %c0_6] : memref<4x1x128xf32, #tpu.memory_space<vmem>>, vector<1x1x128xf32>
    %6 = vector.shape_cast %5 : vector<1x1x128xf32> to vector<1x128xf32>
    %7 = vector.broadcast %6 : vector<1x128xf32> to vector<8x128xf32>
    %8 = arith.addf %4, %7 : vector<8x128xf32>
    %cst_7 = arith.constant 0.000000e+00 : f32
    %9 = vector.broadcast %cst_7 : f32 to vector<8x128xf32>
    %10 = arith.maximumf %8, %9 : vector<8x128xf32>
    %11 = arith.truncf %10 : vector<8x128xf32> to vector<8x128xbf16>
    %c1 = arith.constant 1 : index
    %c0_8 = arith.constant 0 : index
    %c0_9 = arith.constant 0 : index
    %12 = vector.load %arg2[%c1, %c0_8, %c0_9] : memref<4x128x128xbf16, #tpu.memory_space<vmem>>, vector<1x128x128xbf16>
    %13 = vector.shape_cast %12 : vector<1x128x128xbf16> to vector<128x128xbf16>
    %cst_10 = arith.constant dense<0.000000e+00> : vector<8x128xf32>
    %14 = tpu.matmul %11, %13, %cst_10 {dimension_numbers = #tpu.dot_dimension_numbers<[1], [0], [0], [1], [0, 0, 1, 1], [], []>} : vector<8x128xbf16>, vector<128x128xbf16>, vector<8x128xf32> -> vector<8x128xf32>
    %c1_11 = arith.constant 1 : index
    %c0_12 = arith.constant 0 : index
    %c0_13 = arith.constant 0 : index
    %15 = vector.load %arg3[%c1_11, %c0_12, %c0_13] : memref<4x1x128xf32, #tpu.memory_space<vmem>>, vector<1x1x128xf32>
    %16 = vector.shape_cast %15 : vector<1x1x128xf32> to vector<1x128xf32>
    %17 = vector.broadcast %16 : vector<1x128xf32> to vector<8x128xf32>
    %18 = arith.addf %14, %17 : vector<8x128xf32>
    %cst_14 = arith.constant 0.000000e+00 : f32
    %19 = vector.broadcast %cst_14 : f32 to vector<8x128xf32>
    %20 = arith.maximumf %18, %19 : vector<8x128xf32>
    %21 = arith.truncf %20 : vector<8x128xf32> to vector<8x128xbf16>
    %c2 = arith.constant 2 : index
    %c0_15 = arith.constant 0 : index
    %c0_16 = arith.constant 0 : index
    %22 = vector.load %arg2[%c2, %c0_15, %c0_16] : memref<4x128x128xbf16, #tpu.memory_space<vmem>>, vector<1x128x128xbf16>
    %23 = vector.shape_cast %22 : vector<1x128x128xbf16> to vector<128x128xbf16>
    %cst_17 = arith.constant dense<0.000000e+00> : vector<8x128xf32>
    %24 = tpu.matmul %21, %23, %cst_17 {dimension_numbers = #tpu.dot_dimension_numbers<[1], [0], [0], [1], [0, 0, 1, 1], [], []>} : vector<8x128xbf16>, vector<128x128xbf16>, vector<8x128xf32> -> vector<8x128xf32>
    %c2_18 = arith.constant 2 : index
    %c0_19 = arith.constant 0 : index
    %c0_20 = arith.constant 0 : index
    %25 = vector.load %arg3[%c2_18, %c0_19, %c0_20] : memref<4x1x128xf32, #tpu.memory_space<vmem>>, vector<1x1x128xf32>
    %26 = vector.shape_cast %25 : vector<1x1x128xf32> to vector<1x128xf32>
    %27 = vector.broadcast %26 : vector<1x128xf32> to vector<8x128xf32>
    %28 = arith.addf %24, %27 : vector<8x128xf32>
    %cst_21 = arith.constant 0.000000e+00 : f32
    %29 = vector.broadcast %cst_21 : f32 to vector<8x128xf32>
    %30 = arith.maximumf %28, %29 : vector<8x128xf32>
    %31 = arith.truncf %30 : vector<8x128xf32> to vector<8x128xbf16>
    %c3 = arith.constant 3 : index
    %c0_22 = arith.constant 0 : index
    %c0_23 = arith.constant 0 : index
    %32 = vector.load %arg2[%c3, %c0_22, %c0_23] : memref<4x128x128xbf16, #tpu.memory_space<vmem>>, vector<1x128x128xbf16>
    %33 = vector.shape_cast %32 : vector<1x128x128xbf16> to vector<128x128xbf16>
    %cst_24 = arith.constant dense<0.000000e+00> : vector<8x128xf32>
    %34 = tpu.matmul %31, %33, %cst_24 {dimension_numbers = #tpu.dot_dimension_numbers<[1], [0], [0], [1], [0, 0, 1, 1], [], []>} : vector<8x128xbf16>, vector<128x128xbf16>, vector<8x128xf32> -> vector<8x128xf32>
    %c3_25 = arith.constant 3 : index
    %c0_26 = arith.constant 0 : index
    %c0_27 = arith.constant 0 : index
    %35 = vector.load %arg3[%c3_25, %c0_26, %c0_27] : memref<4x1x128xf32, #tpu.memory_space<vmem>>, vector<1x1x128xf32>
    %36 = vector.shape_cast %35 : vector<1x1x128xf32> to vector<1x128xf32>
    %37 = vector.broadcast %36 : vector<1x128xf32> to vector<8x128xf32>
    %38 = arith.addf %34, %37 : vector<8x128xf32>
    %cst_28 = arith.constant 0.000000e+00 : f32
    %39 = vector.broadcast %cst_28 : f32 to vector<8x128xf32>
    %40 = arith.subf %39, %38 : vector<8x128xf32>
    %41 = math.exp %40 : vector<8x128xf32>
    %cst_29 = arith.constant 1.000000e+00 : f32
    %42 = vector.broadcast %cst_29 : f32 to vector<8x128xf32>
    %43 = arith.addf %42, %41 : vector<8x128xf32>
    %44 = tpu.reciprocal %43 {approx = true} : vector<8x128xf32> -> vector<8x128xf32>
    %c0_30 = arith.constant 0 : index
    %c0_31 = arith.constant 0 : index
    %45 = vector.load %arg4[%c0_30, %c0_31] : memref<8x128xf32, #tpu.memory_space<vmem>>, vector<8x128xf32>
    tpu.vector_store %arg4[%c0_30, %c0_31], %44 {strides = array<i32>} : memref<8x128xf32, #tpu.memory_space<vmem>>, vector<8x128xf32>,
    return
  }
  func.func @transform_0(%arg0: i32) -> (i32, i32) {
    %c0_i32 = arith.constant 0 : i32
    %c0_i32_0 = arith.constant 0 : i32
    return %arg0, %c0_i32 : i32, i32
  }
  func.func @transform_1(%arg0: i32) -> (i32, i32, i32) {
    %c0_i32 = arith.constant 0 : i32
    %c0_i32_0 = arith.constant 0 : i32
    %c0_i32_1 = arith.constant 0 : i32
    %c0_i32_2 = arith.constant 0 : i32
    return %c0_i32, %c0_i32_0, %c0_i32_1 : i32, i32, i32
  }
  func.func @transform_2(%arg0: i32) -> (i32, i32, i32) {
    %c0_i32 = arith.constant 0 : i32
    %c0_i32_0 = arith.constant 0 : i32
    %c0_i32_1 = arith.constant 0 : i32
    %c0_i32_2 = arith.constant 0 : i32
    return %c0_i32, %c0_i32_0, %c0_i32_1 : i32, i32, i32
  }
  func.func @transform_3(%arg0: i32) -> (i32, i32) {
    %c0_i32 = arith.constant 0 : i32
    %c0_i32_0 = arith.constant 0 : i32
    return %arg0, %c0_i32 : i32, i32
  }
}

</mosaic_0001>

<bundles_post_ra>
// kernel: nn_model_forward.1
= control target key start
LH: loop header
LB: loop body
LE: loop exit
PB: predicated region body
PF: predicated region fallthrough
CT: control target
= control target key end

     0   :  { %8 = vsyncpa [#allocation3], 0  ;;  %s859_s0 = inlined_call_operand.vmem [shape: f32[8,128], index: 0, kind: input, shape index: {}]   ;;  %s860_s1 = inlined_call_operand.hbm [shape: bf16[4,128,128], index: 1, kind: input, shape index: {}]   ;;  %s861_s2 = inlined_call_operand.vmem [shape: f32[4,1,128], index: 2, kind: input, shape index: {}]   ;;  %s862_s3 = inlined_call_operand.hbm [shape: f32[8,128], index: 3, kind: output, shape index: {}]  }
   0x1   :  { %9 = vsyncpa [#allocation4], 0  ;;  %s754_s12 = smov [#allocation2]   ;;  %s706_s16 = scalar_lea.hbm %s860_s1, 4096 }
   0x2   :  { %s17_s13 = sshll.u32 %s754_s12, 4  ;;  %p707_p0 = scmp.ne.s32.totalorder %s860_s1, %s706_s16  ;;  %s18_s13 = int_to_ptr.vmem [resolvable:$true] %s17_s13 }
   0x3   :  { %p710_p1 = scmp.lt.u32.totalorder %s706_s16, %s860_s1 }
   0x5   :  { %p712_p2 = pnand %p710_p1, %p707_p0 }
   0x7   :  { %715 = shalt.err (!%p712_p2)
}
   0x8   :  { %s716_s21 = scalar_lea.vmem %s18_s13, 4096  ;;  %p721_p4 = scmp.lt.s32.totalorder %s18_s13, %s18_s13 }
   0x9   :  { %p717_p3 = scmp.ne.s32.totalorder %s18_s13, %s716_s21  ;;  %p722_p5 = scmp.lt.s32.totalorder %s716_s21, %s716_s21 }
   0xb   :  { %p723_p6 = por %p722_p5, %p721_p4 }
   0xd   :  { %p724_p7 = pnand %p723_p6, %p717_p3 }
   0xf   :  { %727 = shalt.err (!%p724_p7)
}
  0x10   :  { %s755_s22 = smov 64   ;;  %s756_s23 = smov 4  }
  0x11   :  { %23 = dma.hbm_to_vmem [thread:$0]  %s860_s1, 4096, %s18_s13, [#allocation3], %s755_s22, %s755_s22, %s756_s23  }
  0x12   :  { %750 = dma.done.wait [#allocation3], 4096  }
  0x13   :  { %751 = vsyncadd [#allocation3], 4294963200  ;;  %v757_v0 = vmov 0.0   ;;  %vm758_vm0 = vmmov 0   ;;  %v670_v1 = vld [vmem:[#allocation2] sm:$0xff]   ;;  %v671_v2 = vld [vmem:[#allocation2 + $0x8] sm:$0xff]  }
  0x14   :  { %584 = vmatprep.subr.bf16.mxu0 %v757_v0  ;;  %600 = vmatprep.mubr.msk.bf16.mxu0 %vm758_vm0, %v757_v0  ;;  %v672_v3 = vld [vmem:[#allocation2 + $0x10] sm:$0xff]   ;;  %v678_v4 = vld [vmem:[#allocation2 + $0x40] sm:$0xff]   ;;  %v673_v5 = vld [vmem:[#allocation2 + $0x18] sm:$0xff]   ;;  %s759_s7 = smov [#allocation5]  }
  0x15   :  { %604 = vmatprep.subr.bf16.mxu1 %v757_v0  ;;  %620 = vmatprep.mubr.msk.bf16.mxu1 %vm758_vm0, %v757_v0  ;;  %v679_v6 = vld [vmem:[#allocation2 + $0x48] sm:$0xff]   ;;  %v674_v7 = vld [vmem:[#allocation2 + $0x20] sm:$0xff]   ;;  %v680_v8 = vld [vmem:[#allocation2 + $0x50] sm:$0xff]   ;;  %s500_s8 = sshll.u32 %s759_s7, 4  ;;  %s501_s8 = int_to_ptr.vmem [resolvable:$true] %s500_s8 }
  0x16   :  { %585 = vmatpush3.bf16.msra.mxu0 %v670_v1  ;;  %605 = vmatpush3.bf16.msra.mxu1 %v678_v4  ;;  %v675_v9 = vld [vmem:[#allocation2 + $0x28] sm:$0xff]   ;;  %v681_v10 = vld [vmem:[#allocation2 + $0x58] sm:$0xff]   ;;  %v676_v11 = vld [vmem:[#allocation2 + $0x30] sm:$0xff]   ;;  %s728_s9 = scalar_lea.vmem %s501_s8, 128  ;;  %p733_p9 = scmp.lt.s32.totalorder %s501_s8, %s501_s8 }
  0x17   :  { %586 = vmatprep.subr.bf16.mxu0 %v757_v0  ;;  %606 = vmatprep.subr.bf16.mxu1 %v757_v0  ;;  %v682_v12 = vld [vmem:[#allocation2 + $0x60] sm:$0xff]   ;;  %v677_v13 = vld [vmem:[#allocation2 + $0x38] sm:$0xff]   ;;  %v683_v15 = vld [vmem:[#allocation2 + $0x68] sm:$0xff]   ;;  %p729_p8 = scmp.ne.s32.totalorder %s501_s8, %s728_s9  ;;  %p734_p10 = scmp.lt.s32.totalorder %s728_s9, %s728_s9 }
  0x18   :  { %v30_v14 = vld [vmem:[%s859_s0] sm:$0xff]  ;;  %v684_v17 = vld [vmem:[#allocation2 + $0x70] sm:$0xff]   ;;  %v685_v18 = vld [vmem:[#allocation2 + $0x78] sm:$0xff]  }
  0x19   :  { %v31_v16 = vpack.c.bf16 %v30_v14, %v30_v14  ;;  %v686_v19 = vld [vmem:[#allocation2 + $0x80] sm:$0xff]   ;;  %v687_v20 = vld [vmem:[#allocation2 + $0x88] sm:$0xff]   ;;  %v688_v21 = vld [vmem:[#allocation2 + $0x90] sm:$0xff]   ;;  %p735_p11 = por %p734_p10, %p733_p9 }
  0x1a   :  { %587 = vmatpush3.bf16.msra.mxu0 %v671_v2  ;;  %607 = vmatpush3.bf16.msra.mxu1 %v679_v6  ;;  %v689_v22 = vld [vmem:[#allocation2 + $0x98] sm:$0xff]   ;;  %v690_v23 = vld [vmem:[#allocation2 + $0xa0] sm:$0xff]   ;;  %v691_v24 = vld [vmem:[#allocation2 + $0xa8] sm:$0xff]  }
  0x1b   :  { %588 = vmatprep.subr.bf16.mxu0 %v757_v0  ;;  %608 = vmatprep.subr.bf16.mxu1 %v757_v0  ;;  %v509_v25 = vld [vmem:[%s861_s2] ss:$0 sm:$0xff]  ;;  %v692_v33 = vld [vmem:[#allocation2 + $0xb0] sm:$0xff]   ;;  %v693_v34 = vld [vmem:[#allocation2 + $0xb8] sm:$0xff]   ;;  %p736_p12 = pnand %p735_p11, %p729_p8 }
  0x1c   :  { %v694_v35 = vld [vmem:[#allocation2 + $0xc0] sm:$0xff]   ;;  %v695_v36 = vld [vmem:[#allocation2 + $0xc8] sm:$0xff]   ;;  %v696_v37 = vld [vmem:[#allocation2 + $0xd0] sm:$0xff]  }
  0x1d   :  { %v697_v38 = vld [vmem:[#allocation2 + $0xd8] sm:$0xff]   ;;  %v698_v39 = vld [vmem:[#allocation2 + $0xe0] sm:$0xff]   ;;  %v699_v40 = vld [vmem:[#allocation2 + $0xe8] sm:$0xff]  }
  0x1e   :  { %589 = vmatpush3.bf16.msra.mxu0 %v672_v3  ;;  %609 = vmatpush3.bf16.msra.mxu1 %v680_v8  ;;  %v519_v41 = vld [vmem:[%s861_s2 + $0x1] ss:$0 sm:$0xff]  ;;  %v700_v49 = vld [vmem:[#allocation2 + $0xf0] sm:$0xff]   ;;  %v701_v50 = vld [vmem:[#allocation2 + $0xf8] sm:$0xff]  }
  0x1f   :  { %590 = vmatprep.subr.bf16.mxu0 %v757_v0  ;;  %610 = vmatprep.subr.bf16.mxu1 %v757_v0  ;;  %v529_v51 = vld [vmem:[%s861_s2 + $0x2] ss:$0 sm:$0xff]  ;;  %v539_v59 = vld [vmem:[%s861_s2 + $0x3] ss:$0 sm:$0xff] }
  0x22   :  { %591 = vmatpush3.bf16.msra.mxu0 %v673_v5  ;;  %611 = vmatpush3.bf16.msra.mxu1 %v681_v10 }
  0x23   :  { %592 = vmatprep.subr.bf16.mxu0 %v757_v0  ;;  %612 = vmatprep.subr.bf16.mxu1 %v757_v0 }
  0x26   :  { %593 = vmatpush3.bf16.msra.mxu0 %v674_v7  ;;  %613 = vmatpush3.bf16.msra.mxu1 %v682_v12 }
  0x27   :  { %594 = vmatprep.subr.bf16.mxu0 %v757_v0  ;;  %614 = vmatprep.subr.bf16.mxu1 %v757_v0 }
  0x2a   :  { %595 = vmatpush3.bf16.msra.mxu0 %v675_v9  ;;  %615 = vmatpush3.bf16.msra.mxu1 %v683_v15 }
  0x2b   :  { %596 = vmatprep.subr.bf16.mxu0 %v757_v0  ;;  %616 = vmatprep.subr.bf16.mxu1 %v757_v0 }
  0x2e   :  { %597 = vmatpush3.bf16.msra.mxu0 %v676_v11  ;;  %617 = vmatpush3.bf16.msra.mxu1 %v684_v17 }
  0x2f   :  { %598 = vmatprep.subr.bf16.mxu0 %v757_v0  ;;  %618 = vmatprep.subr.bf16.mxu1 %v757_v0 }
  0x32   :  { %599 = vmatpush3.bf16.msra.mxu0 %v677_v13  ;;  %619 = vmatpush3.bf16.msra.mxu1 %v685_v18 }
  0x33   :  { %624 = vmatprep.subr.bf16.mxu0 %v757_v0  ;;  %644 = vmatprep.subr.bf16.mxu1 %v757_v0 }
  0x35   :  { %601 = vmatmul.mubr.bf16.vlgmr.msra.gmra.mrb[0].mxu0 %v31_v16 }
  0x36   :  { %640 = vmatprep.mubr.msk.bf16.mxu0 %vm758_vm0, %v757_v0  ;;  %625 = vmatpush3.bf16.msra.mxu0 %v686_v19 }
  0x37   :  { %626 = vmatprep.subr.bf16.mxu0 %v757_v0 }
  0x3a   :  { %627 = vmatpush3.bf16.msra.mxu0 %v687_v20 }
  0x3b   :  { %628 = vmatprep.subr.bf16.mxu0 %v757_v0 }
  0x3e   :  { %629 = vmatpush3.bf16.msra.mxu0 %v688_v21 }
  0x3f   :  { %630 = vmatprep.subr.bf16.mxu0 %v757_v0 }
  0x42   :  { %631 = vmatpush3.bf16.msra.mxu0 %v689_v22 }
  0x43   :  { %632 = vmatprep.subr.bf16.mxu0 %v757_v0 }
  0x46   :  { %633 = vmatpush3.bf16.msra.mxu0 %v690_v23 }
  0x47   :  { %634 = vmatprep.subr.bf16.mxu0 %v757_v0 }
  0x4a   :  { %635 = vmatpush3.bf16.msra.mxu0 %v691_v24 }
  0x4b   :  { %636 = vmatprep.subr.bf16.mxu0 %v757_v0 }
  0x4e   :  { %637 = vmatpush3.bf16.msra.mxu0 %v692_v33 }
  0x4f   :  { %638 = vmatprep.subr.bf16.mxu0 %v757_v0 }
  0x52   :  { %639 = vmatpush3.bf16.msra.mxu0 %v693_v34 }
 0x108   :  { %v137_v26 = vpop.f32.mrb[0].mxu0 }
 0x109   :  { %v138_v27 = vadd.f32 %v509_v25, %v137_v26  ;;  %v602_v28 = vpop.f32.mrb[1].mxu0 }
 0x10a   :  { %v140_v29 = vpop.f32.mrb[2].mxu0 }
 0x10b   :  { %v143_v30 = vmax.f32 %v138_v27, 0.0  ;;  %v603_v31 = vpop.f32.mrb[3].mxu0 }
 0x10d   :  { %v144_v32 = vpack.c.bf16 %v143_v30, %v143_v30 }
 0x10f   :  { %621 = vmatmul.mubr.bf16.vlgmr.msra.gmra.mrb[0].mxu1 %v144_v32 }
 0x110   :  { %660 = vmatprep.mubr.msk.bf16.mxu1 %vm758_vm0, %v757_v0  ;;  %645 = vmatpush3.bf16.msra.mxu1 %v694_v35 }
 0x111   :  { %646 = vmatprep.subr.bf16.mxu1 %v757_v0 }
 0x114   :  { %647 = vmatpush3.bf16.msra.mxu1 %v695_v36 }
 0x115   :  { %648 = vmatprep.subr.bf16.mxu1 %v757_v0 }
 0x118   :  { %649 = vmatpush3.bf16.msra.mxu1 %v696_v37 }
 0x119   :  { %650 = vmatprep.subr.bf16.mxu1 %v757_v0 }
 0x11c   :  { %651 = vmatpush3.bf16.msra.mxu1 %v697_v38 }
 0x11d   :  { %652 = vmatprep.subr.bf16.mxu1 %v757_v0 }
 0x120   :  { %653 = vmatpush3.bf16.msra.mxu1 %v698_v39 }
 0x121   :  { %654 = vmatprep.subr.bf16.mxu1 %v757_v0 }
 0x124   :  { %655 = vmatpush3.bf16.msra.mxu1 %v699_v40 }
 0x125   :  { %656 = vmatprep.subr.bf16.mxu1 %v757_v0 }
 0x128   :  { %657 = vmatpush3.bf16.msra.mxu1 %v700_v49 }
 0x129   :  { %658 = vmatprep.subr.bf16.mxu1 %v757_v0 }
 0x12c   :  { %659 = vmatpush3.bf16.msra.mxu1 %v701_v50 }
 0x1e2   :  { %v252_v42 = vpop.f32.mrb[0].mxu1 }
 0x1e3   :  { %v253_v43 = vadd.f32 %v519_v41, %v252_v42  ;;  %v622_v44 = vpop.f32.mrb[1].mxu1 }
 0x1e4   :  { %v255_v45 = vpop.f32.mrb[2].mxu1 }
 0x1e5   :  { %v258_v46 = vmax.f32 %v253_v43, 0.0  ;;  %v623_v47 = vpop.f32.mrb[3].mxu1 }
 0x1e7   :  { %v259_v48 = vpack.c.bf16 %v258_v46, %v258_v46 }
 0x1e9   :  { %641 = vmatmul.mubr.bf16.vlgmr.msra.gmra.mrb[4].mxu0 %v259_v48 }
 0x2bc   :  { %v367_v52 = vpop.f32.mrb[4].mxu0 }
 0x2bd   :  { %v368_v53 = vadd.f32 %v529_v51, %v367_v52  ;;  %v642_v54 = vpop.f32.mrb[5].mxu0 }
 0x2be   :  { %v370_v55 = vpop.f32.mrb[6].mxu0 }
 0x2bf   :  { %v373_v56 = vmax.f32 %v368_v53, 0.0  ;;  %v643_v57 = vpop.f32.mrb[7].mxu0 }
 0x2c1   :  { %v374_v58 = vpack.c.bf16 %v373_v56, %v373_v56 }
 0x2c3   :  { %661 = vmatmul.mubr.bf16.vlgmr.msra.gmra.mrb[4].mxu1 %v374_v58 }
 0x396   :  { %v482_v60 = vpop.f32.mrb[4].mxu1 }
 0x397   :  { %v483_v61 = vadd.f32 %v539_v59, %v482_v60  ;;  %v662_v62 = vpop.f32.mrb[5].mxu1 }
 0x398   :  { %v485_v63 = vpop.f32.mrb[6].mxu1 }
 0x399   :  { %v488_v0 = vsub.f32 0.0, %v483_v61  ;;  %v663_v1 = vpop.f32.mrb[7].mxu1 }
 0x39b   :  { %v489_v2 = vmul.f32 1.442695, %v488_v0 }
 0x39d   :  { %702 = vpow2.f32 %v489_v2 }
 0x3a7   :  { %v703_v3 = vpop.eup %702 }
 0x3a8   :  { %v491_v4 = vadd.f32 1.0, %v703_v3 }
 0x3aa   :  { %704 = vrcp.f32 %v491_v4 }
 0x3b4   :  { %v705_v5 = vpop.eup %704 }
 0x3b5   :  { %493 = vst [vmem:[#allocation5] sm:$0xff] %v705_v5 }
 0x3b6   :  { %739 = shalt.err (!%p736_p12)
}
 0x3b7   :  { %s740_s11 = scalar_lea.hbm %s862_s3, 128 }
 0x3b8   :  { %p741_p13 = scmp.ne.s32.totalorder %s862_s3, %s740_s11  ;;  %p744_p0 = scmp.lt.u32.totalorder %s740_s11, %s862_s3 }
 0x3ba   :  { %p746_p1 = pnand %p744_p0, %p741_p13 }
 0x3bc   :  { %749 = shalt.err (!%p746_p1)
}
 0x3bd   :  { %503 = dma.vmem_to_hbm [thread:$0]  %s501_s8, 128, %s862_s3, [#allocation4]  }
 0x3be   :  { %752 = dma.done.wait [#allocation4], 128  }
 0x3bf   :  { %753 = vsyncadd [#allocation4], 4294967168 }
 0x3c0   :  { %507 = vsyncpa [#allocation3], 1 }
 0x3c1   :  { %508 = vsyncpa [#allocation4], 1 }

</bundles_post_ra>
